<compile_context>
chip_gen: v7x
topology: tpu7x:2x2x1
jax: 0.10.0
libtpu: 0.0.40
codegen_flags: <defaults>
</compile_context>

<pallas_src>
import functools
import math

import jax
import jax.numpy as jnp
from jax.experimental import pallas as pl
from jax.experimental.pallas import tpu as pltpu

EPS = 1e-5
VMEM_LIMIT = 32 * 1024 * 1024   # explicit scoped-VMEM request; fits v7x's 64 MiB with headroom
DEFAULT_TM = 256                # row-tile for the 1x1-conv matmul grids


# ----------------------------- Pallas kernels ------------------------------ #

def _bn_relu_matmul_kernel(x_ref, scale_ref, bias_ref, w_ref, o_ref):
    # o = relu(x*scale + bias) @ w      (BN+ReLU fused in front of the 1x1 conv)
    a = jnp.maximum(x_ref[...] * scale_ref[...] + bias_ref[...], 0.0)
    o_ref[...] = jnp.dot(a, w_ref[...],
                         preferred_element_type=jnp.float32).astype(o_ref.dtype)


def _tail_identity_kernel(x2_ref, s3_ref, b3_ref, w3_ref, res_ref, o_ref):
    # o = relu(x2*scale3 + bias3) @ w3 + residual
    a = jnp.maximum(x2_ref[...] * s3_ref[...] + b3_ref[...], 0.0)
    acc = jnp.dot(a, w3_ref[...], preferred_element_type=jnp.float32)
    o_ref[...] = (acc + res_ref[...]).astype(o_ref.dtype)


def _tail_proj_kernel(x2_ref, s3_ref, b3_ref, w3_ref,
                      xsc_ref, s1_ref, b1_ref, wsc_ref, o_ref):
    # o = relu(x2*scale3 + bias3) @ w3 + relu(xsc*scale1 + bias1) @ wsc
    # (projection shortcut recomputes the cheap BN1+ReLU on the subsampled raw input so the
    #  pre-activation never needs to be materialised in HBM; both dots share one accumulator)
    a = jnp.maximum(x2_ref[...] * s3_ref[...] + b3_ref[...], 0.0)
    acc = jnp.dot(a, w3_ref[...], preferred_element_type=jnp.float32)
    sc = jnp.maximum(xsc_ref[...] * s1_ref[...] + b1_ref[...], 0.0)
    acc = acc + jnp.dot(sc, wsc_ref[...], preferred_element_type=jnp.float32)
    o_ref[...] = acc.astype(o_ref.dtype)


def _conv3x3_bn_relu_kernel(x_ref, scale_ref, bias_ref, w_ref, o_ref, pad_ref, *, stride):
    # x_ref:   (1, H, W, Cin) un-padded input tile (one image)
    # o_ref:   (1, Ho, Wo, Cout) strided output
    # pad_ref: (H+2, W+2, Cin) VMEM scratch holding the zero-padded, BN+ReLU'd image
    _, h, w, cin = x_ref.shape
    _, ho, wo, cout = o_ref.shape

    # Zero the scratch (border must be zero) and write the fused BN2+ReLU result into the
    # interior -- no host-side jnp.pad / no extra HBM pass for the pre-activation.
    pad_ref[...] = jnp.zeros_like(pad_ref)
    s2 = scale_ref[...].reshape(1, 1, cin)
    b2 = bias_ref[...].reshape(1, 1, cin)
    pad_ref[1:h + 1, 1:w + 1, :] = jnp.maximum(x_ref[0] * s2 + b2, 0.0)

    # 9 shifted matmuls; output pixel (i, j) reads xpad[i*stride + kh, j*stride + kw].
    acc = jnp.zeros((ho * wo, cout), jnp.float32)
    for kh in range(3):
        for kw in range(3):
            if stride == 1:
                patch = pad_ref[kh:kh + ho, kw:kw + wo, :]
            else:
                patch = pad_ref[pl.ds(kh, ho, stride), pl.ds(kw, wo, stride), :]
            acc = acc + jnp.dot(patch.reshape(ho * wo, cin), w_ref[kh, kw],
                                preferred_element_type=jnp.float32)
    o_ref[...] = acc.reshape(1, ho, wo, cout).astype(o_ref.dtype)


# ----------------------------- kernel wrappers ------------------------------ #

def _compiler_params():
    return pltpu.CompilerParams(dimension_semantics=("parallel",),
                                vmem_limit_bytes=VMEM_LIMIT)


def bn_relu_matmul(x2d, scale, bias, w, *, tm=DEFAULT_TM):
    m, cin = x2d.shape
    cout = w.shape[1]
    tm = min(tm, m)
    ce = pl.CostEstimate(flops=2 * m * cin * cout, transcendentals=0,
                         bytes_accessed=4 * (m * cin + cin * cout + m * cout + 2 * cin))
    return pl.pallas_call(
        _bn_relu_matmul_kernel,
        grid=(pl.cdiv(m, tm),),
        in_specs=[
            pl.BlockSpec((tm, cin), lambda i: (i, 0)),
            pl.BlockSpec((1, cin), lambda i: (0, 0)),
            pl.BlockSpec((1, cin), lambda i: (0, 0)),
            pl.BlockSpec((cin, cout), lambda i: (0, 0)),
        ],
        out_specs=pl.BlockSpec((tm, cout), lambda i: (i, 0)),
        out_shape=jax.ShapeDtypeStruct((m, cout), x2d.dtype),
        compiler_params=_compiler_params(),
        cost_estimate=ce,
    )(x2d, scale, bias, w)


def bottleneck_tail_identity(x2, s3, b3, w3, residual, *, tm=DEFAULT_TM):
    m, cmid = x2.shape
    cout = w3.shape[1]
    tm = min(tm, m)
    ce = pl.CostEstimate(flops=2 * m * cmid * cout, transcendentals=0,
                         bytes_accessed=4 * (m * cmid + cmid * cout + 2 * m * cout))
    return pl.pallas_call(
        _tail_identity_kernel,
        grid=(pl.cdiv(m, tm),),
        in_specs=[
            pl.BlockSpec((tm, cmid), lambda i: (i, 0)),
            pl.BlockSpec((1, cmid), lambda i: (0, 0)),
            pl.BlockSpec((1, cmid), lambda i: (0, 0)),
            pl.BlockSpec((cmid, cout), lambda i: (0, 0)),
            pl.BlockSpec((tm, cout), lambda i: (i, 0)),
        ],
        out_specs=pl.BlockSpec((tm, cout), lambda i: (i, 0)),
        out_shape=jax.ShapeDtypeStruct((m, cout), x2.dtype),
        compiler_params=_compiler_params(),
        cost_estimate=ce,
    )(x2, s3, b3, w3, residual)


def bottleneck_tail_proj(x2, s3, b3, w3, xsc, s1, b1, wsc, *, tm=DEFAULT_TM):
    m, cmid = x2.shape
    cin = xsc.shape[1]
    cout = w3.shape[1]
    tm = min(tm, m)
    ce = pl.CostEstimate(
        flops=2 * m * cout * (cmid + cin), transcendentals=0,
        bytes_accessed=4 * (m * cmid + m * cin + cmid * cout + cin * cout + m * cout))
    return pl.pallas_call(
        _tail_proj_kernel,
        grid=(pl.cdiv(m, tm),),
        in_specs=[
            pl.BlockSpec((tm, cmid), lambda i: (i, 0)),
            pl.BlockSpec((1, cmid), lambda i: (0, 0)),
            pl.BlockSpec((1, cmid), lambda i: (0, 0)),
            pl.BlockSpec((cmid, cout), lambda i: (0, 0)),
            pl.BlockSpec((tm, cin), lambda i: (i, 0)),
            pl.BlockSpec((1, cin), lambda i: (0, 0)),
            pl.BlockSpec((1, cin), lambda i: (0, 0)),
            pl.BlockSpec((cin, cout), lambda i: (0, 0)),
        ],
        out_specs=pl.BlockSpec((tm, cout), lambda i: (i, 0)),
        out_shape=jax.ShapeDtypeStruct((m, cout), x2.dtype),
        compiler_params=_compiler_params(),
        cost_estimate=ce,
    )(x2, s3, b3, w3, xsc, s1, b1, wsc)


def conv3x3_bn_relu(x_nhwc, scale, bias, w, *, stride=1):
    n, h, wd, cin = x_nhwc.shape
    cout = w.shape[-1]
    ho = (h - 1) // stride + 1
    wo = (wd - 1) // stride + 1
    kernel = functools.partial(_conv3x3_bn_relu_kernel, stride=stride)
    ce = pl.CostEstimate(
        flops=2 * n * ho * wo * 9 * cin * cout, transcendentals=0,
        bytes_accessed=4 * (n * h * wd * cin + 9 * cin * cout + n * ho * wo * cout))
    return pl.pallas_call(
        kernel,
        grid=(n,),
        in_specs=[
            pl.BlockSpec((1, h, wd, cin), lambda b: (b, 0, 0, 0)),
            pl.BlockSpec((1, cin), lambda b: (0, 0)),
            pl.BlockSpec((1, cin), lambda b: (0, 0)),
            pl.BlockSpec((3, 3, cin, cout), lambda b: (0, 0, 0, 0)),
        ],
        out_specs=pl.BlockSpec((1, ho, wo, cout), lambda b: (b, 0, 0, 0)),
        out_shape=jax.ShapeDtypeStruct((n, ho, wo, cout), x_nhwc.dtype),
        scratch_shapes=[pltpu.VMEM((h + 2, wd + 2, cin), jnp.float32)],
        compiler_params=_compiler_params(),
        cost_estimate=ce,
    )(x_nhwc, scale, bias, w)


# ------------------------------- the module --------------------------------- #

class PreActBottleneckPallas:
    """Pre-activation bottleneck block, forward pass built from fused Pallas kernels."""

    expansion = 4

    def __init__(self, in_planes, planes, stride=1, key=None):
        self.in_planes = in_planes
        self.planes = planes
        self.stride = stride
        self.out_planes = self.expansion * planes
        self.has_shortcut = (stride != 1) or (in_planes != self.out_planes)
        if key is None:
            key = jax.random.PRNGKey(0)
        ks = jax.random.split(key, 7)

        def bn_params(k, c):
            k1, k2, k3, k4 = jax.random.split(k, 4)
            g = jax.random.uniform(k1, (c,), jnp.float32, 0.5, 1.5)
            b = 0.1 * jax.random.normal(k2, (c,), jnp.float32)
            mu = 0.1 * jax.random.normal(k3, (c,), jnp.float32)
            v = jax.random.uniform(k4, (c,), jnp.float32, 0.5, 1.5)
            return g, b, mu, v

        self.g1, self.b1, self.mu1, self.v1 = bn_params(ks[0], in_planes)
        self.g2, self.b2, self.mu2, self.v2 = bn_params(ks[1], planes)
        self.g3, self.b3, self.mu3, self.v3 = bn_params(ks[2], planes)

        def fold(g, b, mu, v):
            s = g / jnp.sqrt(v + EPS)
            return s.reshape(1, -1), (b - mu * s).reshape(1, -1)

        self.scale1, self.bias1 = fold(self.g1, self.b1, self.mu1, self.v1)
        self.scale2, self.bias2 = fold(self.g2, self.b2, self.mu2, self.v2)
        self.scale3, self.bias3 = fold(self.g3, self.b3, self.mu3, self.v3)

        # Conv weights, stored in kernel-friendly layouts:
        #   1x1 convs: (Cin, Cout);  3x3 conv: HWIO (3, 3, Cin, Cout).
        self.w1 = jax.random.normal(ks[3], (in_planes, planes), jnp.float32) / math.sqrt(in_planes)
        self.w2 = jax.random.normal(ks[4], (3, 3, planes, planes), jnp.float32) / math.sqrt(9 * planes)
        self.w3 = jax.random.normal(ks[5], (planes, self.out_planes), jnp.float32) / math.sqrt(planes)
        if self.has_shortcut:
            self.wsc = jax.random.normal(ks[6], (in_planes, self.out_planes), jnp.float32) / math.sqrt(in_planes)

    def __call__(self, x_nchw):
        n, c, h, w = x_nchw.shape
        s = self.stride
        ho = (h - 1) // s + 1
        wo = (w - 1) // s + 1

        xh = jnp.transpose(x_nchw, (0, 2, 3, 1))          # NCHW -> NHWC (boundary only)
        x2d = xh.reshape(n * h * w, c)

        # conv1 (1x1) with BN1+ReLU fused in front of the matmul.
        out1 = bn_relu_matmul(x2d, self.scale1, self.bias1, self.w1)       # (N*H*W, planes)

        # conv2 (3x3, stride, pad=1) with BN2+ReLU fused; halo + stride handled in-kernel.
        out2 = conv3x3_bn_relu(out1.reshape(n, h, w, self.planes),
                               self.scale2, self.bias2, self.w2, stride=s)  # (N, Ho, Wo, planes)
        out2_2d = out2.reshape(n * ho * wo, self.planes)

        # conv3 (1x1) with BN3+ReLU fused + residual add / projection fused.
        if self.has_shortcut:
            xsc = xh[:, ::s, ::s, :].reshape(n * ho * wo, c)
            out3 = bottleneck_tail_proj(out2_2d, self.scale3, self.bias3, self.w3,
                                        xsc, self.scale1, self.bias1, self.wsc)
        else:
            out3 = bottleneck_tail_identity(out2_2d, self.scale3, self.bias3, self.w3, x2d)

        out = out3.reshape(n, ho, wo, self.out_planes)
        return jnp.transpose(out, (0, 3, 1, 2))           # NHWC -> NCHW


# ------------------------------ pure-JAX reference --------------------------- #

def ref_forward(x_nchw, m):
    def bn(x, g, b, mu, v):
        return (x - mu) / jnp.sqrt(v + EPS) * g + b

    dn = ("NHWC", "HWIO", "NHWC")
    xh = jnp.transpose(x_nchw, (0, 2, 3, 1))
    pre1 = jax.nn.relu(bn(xh, m.g1, m.b1, m.mu1, m.v1))
    if m.has_shortcut:
        sc = jax.lax.conv_general_dilated(
            pre1, m.wsc.reshape(1, 1, *m.wsc.shape), (m.stride, m.stride), "VALID",
            dimension_numbers=dn)
    else:
        sc = xh
    out = jax.lax.conv_general_dilated(
        pre1, m.w1.reshape(1, 1, *m.w1.shape), (1, 1), "VALID", dimension_numbers=dn)
    out = jax.nn.relu(bn(out, m.g2, m.b2, m.mu2, m.v2))
    out = jax.lax.conv_general_dilated(
        out, m.w2, (m.stride, m.stride), ((1, 1), (1, 1)), dimension_numbers=dn)
    out = jax.nn.relu(bn(out, m.g3, m.b3, m.mu3, m.v3))
    out = jax.lax.conv_general_dilated(
        out, m.w3.reshape(1, 1, *m.w3.shape), (1, 1), "VALID", dimension_numbers=dn)
    out = out + sc
    return jnp.transpose(out, (0, 3, 1, 2))


# ----------------------------------- main ------------------------------------ #

if __name__ == "__main__":
    key = jax.random.PRNGKey(0)
    kx1, kx2, kx3, kp1, kp2, kp3 = jax.random.split(key, 6)

    # Case 1: projection shortcut, stride=2 (exercises strided in-kernel conv + fused proj)
    x1 = jax.random.normal(kx1, (2, 16, 8, 8), jnp.float32)
    blk1 = PreActBottleneckPallas(in_planes=16, planes=8, stride=2, key=kp1)
    y1 = jax.block_until_ready(blk1(x1))
    r1 = ref_forward(x1, blk1)
    assert y1.shape == r1.shape == (2, 32, 4, 4), (y1.shape, r1.shape)
    assert jnp.allclose(y1, r1, atol=1e-3, rtol=1e-3), float(jnp.max(jnp.abs(y1 - r1)))

    # Case 2: identity shortcut, stride=1
    x2 = jax.random.normal(kx2, (2, 32, 8, 8), jnp.float32)
    blk2 = PreActBottleneckPallas(in_planes=32, planes=8, stride=1, key=kp2)
    y2 = jax.block_until_ready(blk2(x2))
    r2 = ref_forward(x2, blk2)
    assert y2.shape == r2.shape == (2, 32, 8, 8), (y2.shape, r2.shape)
    assert jnp.allclose(y2, r2, atol=1e-3, rtol=1e-3), float(jnp.max(jnp.abs(y2 - r2)))

    # Case 3: projection shortcut, stride=1 (channel-expansion-only projection)
    x3 = jax.random.normal(kx3, (2, 16, 8, 8), jnp.float32)
    blk3 = PreActBottleneckPallas(in_planes=16, planes=8, stride=1, key=kp3)
    y3 = jax.block_until_ready(blk3(x3))
    r3 = ref_forward(x3, blk3)
    assert y3.shape == r3.shape == (2, 32, 8, 8), (y3.shape, r3.shape)
    assert jnp.allclose(y3, r3, atol=1e-3, rtol=1e-3), float(jnp.max(jnp.abs(y3 - r3)))

    print("KERNEL_OK")
</pallas_src>

<mosaic_0001>
module attributes {stable_mosaic.version = 11 : i64} {
  func.func @_bn_relu_matmul_kernel(%arg0: i32, %arg1: memref<128x16xf32, #tpu.memory_space<vmem>>, %arg2: memref<1x16xf32, #tpu.memory_space<vmem>>, %arg3: memref<1x16xf32, #tpu.memory_space<vmem>>, %arg4: memref<16x8xf32, #tpu.memory_space<vmem>>, %arg5: memref<128x8xf32, #tpu.memory_space<vmem>>) attributes {dimension_semantics = [#tpu.dimension_semantics<parallel>], iteration_bounds = array<i64: 1>, scalar_prefetch = 0 : i64, scratch_operands = 0 : i64, tpu.core_type = #tpu.core_type<tc>, window_params = [{transform_indices = @transform_0, window_bounds = array<i64: 128, 16>}, {pipeline_mode = #tpu.pipeline_mode<synchronous>, transform_indices = @transform_1, window_bounds = array<i64: 1, 16>}, {pipeline_mode = #tpu.pipeline_mode<synchronous>, transform_indices = @transform_2, window_bounds = array<i64: 1, 16>}, {pipeline_mode = #tpu.pipeline_mode<synchronous>, transform_indices = @transform_3, window_bounds = array<i64: 16, 8>}, {transform_indices = @transform_4, window_bounds = array<i64: 128, 8>}]} {
    %c0 = arith.constant 0 : index
    %c0_0 = arith.constant 0 : index
    %0 = vector.load %arg1[%c0, %c0_0] : memref<128x16xf32, #tpu.memory_space<vmem>>, vector<128x16xf32>
    %c0_1 = arith.constant 0 : index
    %c0_2 = arith.constant 0 : index
    %1 = vector.load %arg2[%c0_1, %c0_2] : memref<1x16xf32, #tpu.memory_space<vmem>>, vector<1x16xf32>
    %2 = vector.broadcast %1 : vector<1x16xf32> to vector<128x16xf32>
    %3 = arith.mulf %0, %2 : vector<128x16xf32>
    %c0_3 = arith.constant 0 : index
    %c0_4 = arith.constant 0 : index
    %4 = vector.load %arg3[%c0_3, %c0_4] : memref<1x16xf32, #tpu.memory_space<vmem>>, vector<1x16xf32>
    %5 = vector.broadcast %4 : vector<1x16xf32> to vector<128x16xf32>
    %6 = arith.addf %3, %5 : vector<128x16xf32>
    %cst = arith.constant 0.000000e+00 : f32
    %7 = vector.broadcast %cst : f32 to vector<128x16xf32>
    %8 = arith.maximumf %6, %7 : vector<128x16xf32>
    %c0_5 = arith.constant 0 : index
    %c0_6 = arith.constant 0 : index
    %9 = vector.load %arg4[%c0_5, %c0_6] : memref<16x8xf32, #tpu.memory_space<vmem>>, vector<16x8xf32>
    %cst_7 = arith.constant dense<0.000000e+00> : vector<128x8xf32>
    %10 = tpu.matmul %8, %9, %cst_7 {dimension_numbers = #tpu.dot_dimension_numbers<[1], [0], [0], [1], [0, 0, 1, 1], [], []>} : vector<128x16xf32>, vector<16x8xf32>, vector<128x8xf32> -> vector<128x8xf32>
    %c0_8 = arith.constant 0 : index
    %c0_9 = arith.constant 0 : index
    %11 = vector.load %arg5[%c0_8, %c0_9] : memref<128x8xf32, #tpu.memory_space<vmem>>, vector<128x8xf32>
    tpu.vector_store %arg5[%c0_8, %c0_9], %10 {strides = array<i32>} : memref<128x8xf32, #tpu.memory_space<vmem>>, vector<128x8xf32>,
    return
  }
  func.func @transform_0(%arg0: i32) -> (i32, i32) {
    %c0_i32 = arith.constant 0 : i32
    %c0_i32_0 = arith.constant 0 : i32
    return %arg0, %c0_i32 : i32, i32
  }
  func.func @transform_1(%arg0: i32) -> (i32, i32) {
    %c0_i32 = arith.constant 0 : i32
    %c0_i32_0 = arith.constant 0 : i32
    %c0_i32_1 = arith.constant 0 : i32
    return %c0_i32, %c0_i32_0 : i32, i32
  }
  func.func @transform_2(%arg0: i32) -> (i32, i32) {
    %c0_i32 = arith.constant 0 : i32
    %c0_i32_0 = arith.constant 0 : i32
    %c0_i32_1 = arith.constant 0 : i32
    return %c0_i32, %c0_i32_0 : i32, i32
  }
  func.func @transform_3(%arg0: i32) -> (i32, i32) {
    %c0_i32 = arith.constant 0 : i32
    %c0_i32_0 = arith.constant 0 : i32
    %c0_i32_1 = arith.constant 0 : i32
    return %c0_i32, %c0_i32_0 : i32, i32
  }
  func.func @transform_4(%arg0: i32) -> (i32, i32) {
    %c0_i32 = arith.constant 0 : i32
    %c0_i32_0 = arith.constant 0 : i32
    return %arg0, %c0_i32 : i32, i32
  }
}

</mosaic_0001>

<bundles_post_ra>
// kernel: tpu_custom_call.1
= control target key start
LH: loop header
LB: loop body
LE: loop exit
PB: predicated region body
PF: predicated region fallthrough
CT: control target
= control target key end

     0   :  { %vm97_vm0 = vcmask 130048   ;;  %vm291_vm1 = vcmask 64512   ;;  %s583_s3 = inlined_call_operand.vmem [shape: f32[16,8], index: 3, kind: input, shape index: {}]   ;;  %s584_s0 = inlined_call_operand.vmem [shape: f32[128,16], index: 0, kind: input, shape index: {}]   ;;  %s585_s1 = inlined_call_operand.vmem [shape: f32[1,16], index: 1, kind: input, shape index: {}]   ;;  %s586_s2 = inlined_call_operand.vmem [shape: f32[1,16], index: 2, kind: input, shape index: {}]   ;;  %s587_s4 = inlined_call_operand.vmem [shape: f32[128,8], index: 4, kind: output, shape index: {}]  }
   0x1   :  { %v95_v0 = vld [vmem:[%s583_s3] sm:$0xff]  ;;  %v96_v1 = vld [vmem:[%s583_s3 + $0x8] sm:$0xff]  ;;  %v19_v11 = vld [vmem:[%s584_s0 + $0x10] sm:$0xff] }
   0x2   :  { %v17_v2 = vld [vmem:[%s584_s0] sm:$0xff]  ;;  %v376_v3 = vpack.c.bf16 %v96_v1, %v95_v0  ;;  %v18_v9 = vld [vmem:[%s584_s0 + $0x8] sm:$0xff]  ;;  %v27_v15 = vld [vmem:[%s584_s0 + $0x50] sm:$0xff] }
   0x3   :  { %v419_v4 = vld [vmem:[%s585_s1] ss:$0 sm:$0xff]  ;;  %v26_v10 = vld [vmem:[%s584_s0 + $0x48] sm:$0xff]  ;;  %v20_v16 = vld [vmem:[%s584_s0 + $0x18] sm:$0xff] }
   0x4   :  { %v424_v5 = vld [vmem:[%s586_s2] ss:$0 sm:$0xff]  ;;  %v40_v7 = vmul.f32 %v419_v4, %v17_v2  ;;  %377 = vmatprep.subr.bf16.mxu0 %v376_v3  ;;  %380 = vmatprep.subr.bf16.mxu1 %v376_v3  ;;  %v41_v12 = vmul.f32 %v419_v4, %v18_v9  ;;  %v49_v13 = vmul.f32 %v419_v4, %v26_v10  ;;  %v28_v17 = vld [vmem:[%s584_s0 + $0x58] sm:$0xff]  ;;  %v22_v31 = vld [vmem:[%s584_s0 + $0x28] sm:$0xff] }
   0x5   :  { %v25_v6 = vld [vmem:[%s584_s0 + $0x40] sm:$0xff]  ;;  %v42_v14 = vmul.f32 %v419_v4, %v19_v11  ;;  %379 = vmatpush3.bf16.msra.mxu0 %v376_v3  ;;  %381 = vmatpush3.bf16.msra.mxu1 %v376_v3  ;;  %v50_v20 = vmul.f32 %v419_v4, %v27_v15  ;;  %v43_v24 = vmul.f32 %v419_v4, %v20_v16  ;;  %v30_v32 = vld [vmem:[%s584_s0 + $0x68] sm:$0xff]  ;;  %v23_v33 = vld [vmem:[%s584_s0 + $0x30] sm:$0xff] }
   0x6   :  { %v48_v8 = vmul.f32 %v419_v4, %v25_v6  ;;  %v63_v18 = vadd.f32 %v424_v5, %v40_v7  ;;  %v64_v21 = vadd.f32 %v424_v5, %v41_v12  ;;  %v72_v22 = vadd.f32 %v424_v5, %v49_v13  ;;  %v21_v25 = vld [vmem:[%s584_s0 + $0x20] sm:$0xff]  ;;  %v31_v38 = vld [vmem:[%s584_s0 + $0x70] sm:$0xff]  ;;  %v24_v43 = vld [vmem:[%s584_s0 + $0x38] sm:$0xff] }
   0x7   :  { %v65_v23 = vadd.f32 %v424_v5, %v42_v14  ;;  %v29_v26 = vld [vmem:[%s584_s0 + $0x60] sm:$0xff]  ;;  %v73_v29 = vadd.f32 %v424_v5, %v50_v20  ;;  %v51_v30 = vmul.f32 %v419_v4, %v28_v17  ;;  %v66_v37 = vadd.f32 %v424_v5, %v43_v24  ;;  %v32_v48 = vld [vmem:[%s584_s0 + $0x78] sm:$0xff] }
   0x8   :  { %v71_v19 = vadd.f32 %v424_v5, %v48_v8  ;;  %v79_v27 = vmax.f32 %v63_v18, 0.0  ;;  %v80_v34 = vmax.f32 %v64_v21, 0.0  ;;  %v88_v35 = vmax.f32 %v72_v22, 0.0 }
   0x9   :  { %v81_v36 = vmax.f32 %v65_v23, 0.0  ;;  %v89_v39 = vmax.f32 %v73_v29, 0.0  ;;  %v74_v40 = vadd.f32 %v424_v5, %v51_v30  ;;  %v44_v41 = vmul.f32 %v419_v4, %v21_v25 }
   0xa   :  { %v87_v28 = vmax.f32 %v71_v19, 0.0  ;;  %352 = vmatprep.mubr.msk.f32.mxu0 %vm97_vm0, %v79_v27  ;;  %v52_v42 = vmul.f32 %v419_v4, %v29_v26  ;;  %v82_v44 = vmax.f32 %v66_v37, 0.0  ;;  %v45_v45 = vmul.f32 %v419_v4, %v22_v31 }
   0xb   :  { %353 = vmatmul.mubr.msk.f32.vlgmr.msra.gmra.mrb[0].mxu0 %vm97_vm0, %v80_v34  ;;  %v53_v46 = vmul.f32 %v419_v4, %v30_v32  ;;  %v46_v47 = vmul.f32 %v419_v4, %v23_v33  ;;  %v90_v49 = vmax.f32 %v74_v40, 0.0  ;;  %v67_v50 = vadd.f32 %v424_v5, %v44_v41 }
   0xc   :  { %364 = vmatprep.mubr.msk.f32.mxu1 %vm97_vm0, %v87_v28  ;;  %355 = vmatprep.mubr.msk.f32.mxu0 %vm97_vm0, %v81_v36  ;;  %v75_v51 = vadd.f32 %v424_v5, %v52_v42  ;;  %v54_v52 = vmul.f32 %v419_v4, %v31_v38  ;;  %v68_v53 = vadd.f32 %v424_v5, %v45_v45 }
   0xd   :  { %365 = vmatmul.mubr.msk.f32.vlgmr.msra.gmra.mrb[0].mxu1 %vm97_vm0, %v88_v35  ;;  %v76_v54 = vadd.f32 %v424_v5, %v53_v46  ;;  %v69_v55 = vadd.f32 %v424_v5, %v46_v47  ;;  %v47_v56 = vmul.f32 %v419_v4, %v24_v43  ;;  %v83_v57 = vmax.f32 %v67_v50, 0.0 }
   0xe   :  { %367 = vmatprep.mubr.msk.f32.mxu1 %vm97_vm0, %v89_v39  ;;  %v91_v58 = vmax.f32 %v75_v51, 0.0  ;;  %v77_v59 = vadd.f32 %v424_v5, %v54_v52  ;;  %v55_v60 = vmul.f32 %v419_v4, %v32_v48  ;;  %v84_v61 = vmax.f32 %v68_v53, 0.0 }
   0xf   :  { %356 = vmatmul.mubr.msk.f32.gmra.mrb[2].mxu0 %vm97_vm0, %v82_v44  ;;  %v92_v62 = vmax.f32 %v76_v54, 0.0  ;;  %v70_v63 = vadd.f32 %v424_v5, %v47_v56  ;;  %v85_v0 = vmax.f32 %v69_v55, 0.0 }
  0x10   :  { %358 = vmatprep.mubr.msk.f32.mxu0 %vm97_vm0, %v83_v57  ;;  %v93_v1 = vmax.f32 %v77_v59, 0.0  ;;  %v78_v2 = vadd.f32 %v424_v5, %v55_v60 }
  0x11   :  { %368 = vmatmul.mubr.msk.f32.gmra.mrb[2].mxu1 %vm97_vm0, %v90_v49  ;;  %v86_v3 = vmax.f32 %v70_v63, 0.0 }
  0x12   :  { %370 = vmatprep.mubr.msk.f32.mxu1 %vm97_vm0, %v91_v58  ;;  %v94_v4 = vmax.f32 %v78_v2, 0.0 }
  0x13   :  { %359 = vmatmul.mubr.msk.f32.gmra.mrb[4].mxu0 %vm97_vm0, %v84_v61 }
  0x14   :  { %361 = vmatprep.mubr.msk.f32.mxu0 %vm97_vm0, %v85_v0 }
  0x15   :  { %371 = vmatmul.mubr.msk.f32.gmra.mrb[4].mxu1 %vm97_vm0, %v92_v62 }
  0x16   :  { %373 = vmatprep.mubr.msk.f32.mxu1 %vm97_vm0, %v93_v1 }
  0x17   :  { %362 = vmatmul.mubr.msk.f32.gmra.mrb[6].mxu0 %vm97_vm0, %v86_v3 }
  0x19   :  { %374 = vmatmul.mubr.msk.f32.gmra.mrb[6].mxu1 %vm97_vm0, %v94_v4 }
  0xde   :  { %v354_v6 = vpop.f32.mrb[0].mxu0 }
  0xdf   :  { %293 = vst.msk [vmem:[%s587_s4 + $0x8] sm:$0xff] %vm291_vm1, %v354_v6  ;;  %v212_v5 = vpop.f32.mrb[1].mxu0 }
  0xe0   :  { %v366_v7 = vpop.f32.mrb[0].mxu1  ;;  %292 = vst.msk [vmem:[%s587_s4] sm:$0xff] %vm291_vm1, %v212_v5 }
  0xe1   :  { %301 = vst.msk [vmem:[%s587_s4 + $0x48] sm:$0xff] %vm291_vm1, %v366_v7  ;;  %v252_v8 = vpop.f32.mrb[1].mxu1 }
  0xe2   :  { %300 = vst.msk [vmem:[%s587_s4 + $0x40] sm:$0xff] %vm291_vm1, %v252_v8  ;;  %v357_v9 = vpop.f32.mrb[2].mxu0 }
  0xe3   :  { %295 = vst.msk [vmem:[%s587_s4 + $0x18] sm:$0xff] %vm291_vm1, %v357_v9  ;;  %v222_v11 = vpop.f32.mrb[3].mxu0 }
  0xe4   :  { %v369_v10 = vpop.f32.mrb[2].mxu1  ;;  %294 = vst.msk [vmem:[%s587_s4 + $0x10] sm:$0xff] %vm291_vm1, %v222_v11 }
  0xe5   :  { %303 = vst.msk [vmem:[%s587_s4 + $0x58] sm:$0xff] %vm291_vm1, %v369_v10  ;;  %v262_v12 = vpop.f32.mrb[3].mxu1 }
  0xe6   :  { %302 = vst.msk [vmem:[%s587_s4 + $0x50] sm:$0xff] %vm291_vm1, %v262_v12  ;;  %v360_v13 = vpop.f32.mrb[4].mxu0 }
  0xe7   :  { %297 = vst.msk [vmem:[%s587_s4 + $0x28] sm:$0xff] %vm291_vm1, %v360_v13  ;;  %v232_v15 = vpop.f32.mrb[5].mxu0 }
  0xe8   :  { %v372_v14 = vpop.f32.mrb[4].mxu1  ;;  %296 = vst.msk [vmem:[%s587_s4 + $0x20] sm:$0xff] %vm291_vm1, %v232_v15 }
  0xe9   :  { %305 = vst.msk [vmem:[%s587_s4 + $0x68] sm:$0xff] %vm291_vm1, %v372_v14  ;;  %v272_v16 = vpop.f32.mrb[5].mxu1 }
  0xea   :  { %304 = vst.msk [vmem:[%s587_s4 + $0x60] sm:$0xff] %vm291_vm1, %v272_v16  ;;  %v363_v17 = vpop.f32.mrb[6].mxu0 }
  0xeb   :  { %299 = vst.msk [vmem:[%s587_s4 + $0x38] sm:$0xff] %vm291_vm1, %v363_v17  ;;  %v242_v19 = vpop.f32.mrb[7].mxu0 }
  0xec   :  { %v375_v18 = vpop.f32.mrb[6].mxu1  ;;  %298 = vst.msk [vmem:[%s587_s4 + $0x30] sm:$0xff] %vm291_vm1, %v242_v19 }
  0xed   :  { %307 = vst.msk [vmem:[%s587_s4 + $0x78] sm:$0xff] %vm291_vm1, %v375_v18  ;;  %v282_v20 = vpop.f32.mrb[7].mxu1 }
  0xee   :  { %306 = vst.msk [vmem:[%s587_s4 + $0x70] sm:$0xff] %vm291_vm1, %v282_v20 }

</bundles_post_ra>
